<compile_context>
chip_gen: v5e
topology: v5e:2x2
jax: 0.10.0
libtpu: 0.0.40
codegen_flags: <defaults>
</compile_context>

<pallas_src>
import functools

import jax
import jax.numpy as jnp
import numpy as np
from jax.experimental import pallas as pl
from jax.experimental.pallas import tpu as pltpu


def _round_up(x: int, m: int) -> int:
    return ((x + m - 1) // m) * m


def _ols_kernel(yh_ref, y_ref, supT_ref, out_ref, acc_ref, *,
                alpha: float, batch: int, tb: int):
    pid = pl.program_id(0)
    nprog = pl.num_programs(0)

    @pl.when(pid == 0)
    def _init():
        acc_ref[...] = jnp.zeros_like(acc_ref)

    yh = yh_ref[...]                 # (TB, C) f32 logits tile
    labels = y_ref[...]              # (TB, 1) i32 labels tile
    supT = supT_ref[...]             # (C, C)  f32, supT[k, c] = supervise[c, k]
    TB, C = yh.shape

    # Numerically-stable log_softmax along the class axis (lanes).
    m = jnp.max(yh, axis=-1, keepdims=True)
    z = yh - m
    lse = jnp.log(jnp.sum(jnp.exp(z), axis=-1, keepdims=True))
    logp = z - lse                                            # (TB, C)

    # One-hot labels via 2D iota (TPU requires >= 2D iota).
    cls = jax.lax.broadcasted_iota(jnp.int32, (TB, C), 1)
    one_hot = (cls == labels).astype(jnp.float32)             # (TB, C)

    # true_dist[b, c] = supervise[c, y[b]] = supT[y[b], c] = (one_hot @ supT)[b, c]
    # (no in-kernel transpose; supT is pre-transposed on the host.)
    true_dist = jnp.dot(one_hot, supT, preferred_element_type=jnp.float32)

    # Fused hard + soft reduction: a single (TB,C) multiply + one lane reduce.
    combined = alpha * one_hot + (1.0 - alpha) * true_dist
    per_row = -jnp.sum(combined * logp, axis=-1, keepdims=True)   # (TB, 1)

    # Mask rows that are only batch padding; divide by the TRUE batch at the end.
    rows = pid * tb + jax.lax.broadcasted_iota(jnp.int32, (TB, 1), 0)
    per_row = jnp.where(rows < batch, per_row, 0.0)

    acc_ref[...] += jnp.sum(per_row, keepdims=True)               # (1, 1)

    @pl.when(pid == nprog - 1)
    def _finalize():
        out_ref[...] = acc_ref[...] * (1.0 / batch)


def _vmem_limit_bytes(tb: int, c: int) -> int:
    yh_tile = tb * c * 4
    lbl_tile = tb * 128 * 4          # (TB, 1) i32 pads to full 128-lane vregs
    sup = c * c * 4
    # double-buffered inputs + headroom for tile-sized intermediates
    need = 2 * (yh_tile + lbl_tile) + sup + 8 * yh_tile
    return int(min(max(4 * need, 32 * 1024 * 1024), 64 * 1024 * 1024))


def online_label_smoothing_loss(y_h, y, supervise, alpha, *, tb=None):
    """Pallas forward pass of OnlineLabelSmoothing (eval mode). Returns scalar loss."""
    B, C = y_h.shape

    # Batch tile: multiple of 8 sublanes, capped for VMEM / MXU friendliness.
    if tb is None:
        tb = min(_round_up(B, 8), 256)
    tb = max(8, _round_up(int(tb), 8))
    padded_b = _round_up(B, tb)
    grid_n = padded_b // tb

    yh32 = y_h.astype(jnp.float32)
    y2d = y.astype(jnp.int32).reshape(B, 1)
    if padded_b != B:
        yh32 = jnp.pad(yh32, ((0, padded_b - B), (0, 0)))
        y2d = jnp.pad(y2d, ((0, padded_b - B), (0, 0)))

    # Host-side, one-time transpose so the kernel never runs an XLU transpose.
    supT = jnp.transpose(supervise.astype(jnp.float32))

    kernel = functools.partial(_ols_kernel, alpha=float(alpha), batch=B, tb=tb)

    out = pl.pallas_call(
        kernel,
        out_shape=jax.ShapeDtypeStruct((1, 1), jnp.float32),
        grid=(grid_n,),
        in_specs=[
            pl.BlockSpec((tb, C), lambda i: (i, 0)),   # y_h tile   (pipelined)
            pl.BlockSpec((tb, 1), lambda i: (i, 0)),   # labels tile
            pl.BlockSpec((C, C), lambda i: (0, 0)),    # supT, resident across grid
        ],
        out_specs=pl.BlockSpec((1, 1), lambda i: (0, 0)),         # scalar loss block
        scratch_shapes=[pltpu.VMEM((1, 1), jnp.float32)],          # loss accumulator
        compiler_params=pltpu.CompilerParams(
            # The batch axis carries the scalar accumulator -> "arbitrary".
            dimension_semantics=("arbitrary",),
            vmem_limit_bytes=_vmem_limit_bytes(tb, C),
        ),
    )(yh32, y2d, supT)
    return out[0, 0]


def make_supervise(n_classes: int, smoothing: float) -> jnp.ndarray:
    """Deterministic buffer init matching the module's __init__."""
    off = smoothing / (n_classes - 1)
    sup = jnp.full((n_classes, n_classes), off, dtype=jnp.float32)
    sup = sup.at[jnp.arange(n_classes), jnp.arange(n_classes)].set(1.0 - smoothing)
    return sup


def _reference_loss(y_h, y, supervise, alpha):
    """Pure-JAX reference for correctness checking."""
    logp = jax.nn.log_softmax(y_h, axis=-1)
    true_dist = supervise[:, y].swapaxes(-1, -2)            # (B, C)
    soft = jnp.mean(jnp.sum(-true_dist * logp, axis=-1))
    hard = jnp.mean(-jnp.take_along_axis(logp, y[:, None], axis=-1)[:, 0])
    return alpha * hard + (1.0 - alpha) * soft


if __name__ == "__main__":
    alpha, smoothing = 0.5, 0.1
    key = jax.random.PRNGKey(0)

    # Case 1: small, single tile, symmetric supervise.
    B1, C1 = 8, 16
    k1, k2, key = jax.random.split(key, 3)
    y_h1 = jax.random.normal(k1, (B1, C1), dtype=jnp.float32)
    y1 = jax.random.randint(k2, (B1,), 0, C1, dtype=jnp.int32)
    sup1 = make_supervise(C1, smoothing)
    loss1 = jax.block_until_ready(online_label_smoothing_loss(y_h1, y1, sup1, alpha))
    ref1 = _reference_loss(y_h1, y1, sup1, alpha)
    np.testing.assert_allclose(np.asarray(loss1), np.asarray(ref1), rtol=1e-5, atol=1e-5)

    # Case 2: multi-tile grid + batch-tail masking + NON-symmetric supervise
    # (catches any transpose-handling bug that a symmetric matrix would hide).
    B2, C2 = 37, 24
    k3, k4, k5 = jax.random.split(key, 3)
    y_h2 = jax.random.normal(k3, (B2, C2), dtype=jnp.float32)
    y2 = jax.random.randint(k4, (B2,), 0, C2, dtype=jnp.int32)
    sup2 = make_supervise(C2, smoothing) + 0.01 * jax.random.normal(k5, (C2, C2), dtype=jnp.float32)
    loss2 = jax.block_until_ready(
        online_label_smoothing_loss(y_h2, y2, sup2, alpha, tb=8))   # grid=(5,), last tile masked
    ref2 = _reference_loss(y_h2, y2, sup2, alpha)
    np.testing.assert_allclose(np.asarray(loss2), np.asarray(ref2), rtol=1e-5, atol=1e-5)

    print("KERNEL_OK")
</pallas_src>

<mosaic_0001>
module attributes {stable_mosaic.version = 11 : i64} {
  func.func @_ols_kernel(%arg0: i32, %arg1: memref<8x16xf32, #tpu.memory_space<vmem>>, %arg2: memref<8x1xi32, #tpu.memory_space<vmem>>, %arg3: memref<16x16xf32, #tpu.memory_space<vmem>>, %arg4: memref<1x1xf32, #tpu.memory_space<vmem>>, %arg5: memref<1x1xf32, #tpu.memory_space<vmem>>) attributes {dimension_semantics = [#tpu.dimension_semantics<arbitrary>], iteration_bounds = array<i64: 1>, scalar_prefetch = 0 : i64, scratch_operands = 1 : i64, tpu.core_type = #tpu.core_type<tc>, window_params = [{transform_indices = @transform_0, window_bounds = array<i64: 8, 16>}, {transform_indices = @transform_1, window_bounds = array<i64: 8, 1>}, {pipeline_mode = #tpu.pipeline_mode<synchronous>, transform_indices = @transform_2, window_bounds = array<i64: 16, 16>}, {pipeline_mode = #tpu.pipeline_mode<synchronous>, transform_indices = @transform_3, window_bounds = array<i64: 1, 1>}]} {
    %c0_i32 = arith.constant 0 : i32
    %0 = arith.cmpi eq, %arg0, %c0_i32 : i32
    %1 = arith.extui %0 : i1 to i32
    %c0_i32_0 = arith.constant 0 : i32
    %2 = arith.cmpi ne, %1, %c0_i32_0 : i32
    scf.if %2 {
      %cst_21 = arith.constant 0.000000e+00 : f32
      %51 = vector.broadcast %cst_21 : f32 to vector<1x1xf32>
      %c0_22 = arith.constant 0 : index
      %c0_23 = arith.constant 0 : index
      %52 = vector.load %arg5[%c0_22, %c0_23] : memref<1x1xf32, #tpu.memory_space<vmem>>, vector<1x1xf32>
      tpu.vector_store %arg5[%c0_22, %c0_23], %51 {strides = array<i32>} : memref<1x1xf32, #tpu.memory_space<vmem>>, vector<1x1xf32>,
    } else {
    }
    %c0 = arith.constant 0 : index
    %c0_1 = arith.constant 0 : index
    %3 = vector.load %arg1[%c0, %c0_1] : memref<8x16xf32, #tpu.memory_space<vmem>>, vector<8x16xf32>
    %c0_2 = arith.constant 0 : index
    %c0_3 = arith.constant 0 : index
    %4 = vector.load %arg2[%c0_2, %c0_3] : memref<8x1xi32, #tpu.memory_space<vmem>>, vector<8x1xi32>
    %c0_4 = arith.constant 0 : index
    %c0_5 = arith.constant 0 : index
    %5 = vector.load %arg3[%c0_4, %c0_5] : memref<16x16xf32, #tpu.memory_space<vmem>>, vector<16x16xf32>
    %cst = arith.constant dense<0xFF800000> : vector<8xf32>
    %6 = vector.multi_reduction <maximumf>, %3, %cst [1] : vector<8x16xf32> to vector<8xf32>
    %7 = vector.shape_cast %6 : vector<8xf32> to vector<8x1xf32>
    %8 = vector.broadcast %7 : vector<8x1xf32> to vector<8x16xf32>
    %9 = arith.subf %3, %8 : vector<8x16xf32>
    %10 = math.exp %9 : vector<8x16xf32>
    %cst_6 = arith.constant dense<0.000000e+00> : vector<8xf32>
    %11 = vector.multi_reduction <add>, %10, %cst_6 [1] : vector<8x16xf32> to vector<8xf32>
    %12 = vector.shape_cast %11 : vector<8xf32> to vector<8x1xf32>
    %13 = math.log %12 : vector<8x1xf32>
    %14 = vector.broadcast %13 : vector<8x1xf32> to vector<8x16xf32>
    %15 = arith.subf %9, %14 : vector<8x16xf32>
    %16 = tpu.iota {dimensions = array<i32: 1>} : vector<8x16xi32>
    %17 = vector.broadcast %4 : vector<8x1xi32> to vector<8x16xi32>
    %18 = arith.cmpi eq, %16, %17 : vector<8x16xi32>
    %19 = arith.extui %18 : vector<8x16xi1> to vector<8x16xi32>
    %20 = arith.sitofp %19 : vector<8x16xi32> to vector<8x16xf32>
    %cst_7 = arith.constant dense<0.000000e+00> : vector<8x16xf32>
    %21 = tpu.matmul %20, %5, %cst_7 {dimension_numbers = #tpu.dot_dimension_numbers<[1], [0], [0], [1], [0, 0, 1, 1], [], []>} : vector<8x16xf32>, vector<16x16xf32>, vector<8x16xf32> -> vector<8x16xf32>
    %cst_8 = arith.constant 5.000000e-01 : f32
    %22 = vector.broadcast %cst_8 : f32 to vector<8x16xf32>
    %23 = arith.mulf %22, %20 : vector<8x16xf32>
    %cst_9 = arith.constant 5.000000e-01 : f32
    %24 = vector.broadcast %cst_9 : f32 to vector<8x16xf32>
    %25 = arith.mulf %24, %21 : vector<8x16xf32>
    %26 = arith.addf %23, %25 : vector<8x16xf32>
    %27 = arith.mulf %26, %15 : vector<8x16xf32>
    %cst_10 = arith.constant dense<0.000000e+00> : vector<8xf32>
    %28 = vector.multi_reduction <add>, %27, %cst_10 [1] : vector<8x16xf32> to vector<8xf32>
    %29 = vector.shape_cast %28 : vector<8xf32> to vector<8x1xf32>
    %cst_11 = arith.constant 0.000000e+00 : f32
    %30 = vector.broadcast %cst_11 : f32 to vector<8x1xf32>
    %31 = arith.subf %30, %29 : vector<8x1xf32>
    %c8_i32 = arith.constant 8 : i32
    %32 = arith.muli %arg0, %c8_i32 : i32
    %33 = tpu.iota {dimensions = array<i32: 0>} : vector<8x1xi32>
    %34 = vector.broadcast %32 : i32 to vector<8x1xi32>
    %35 = arith.addi %34, %33 : vector<8x1xi32>
    %c8_i32_12 = arith.constant 8 : i32
    %36 = vector.broadcast %c8_i32_12 : i32 to vector<8x1xi32>
    %37 = arith.cmpi slt, %35, %36 : vector<8x1xi32>
    %cst_13 = arith.constant 0.000000e+00 : f32
    %38 = vector.broadcast %cst_13 : f32 to vector<8x1xf32>
    %39 = arith.select %37, %31, %38 : vector<8x1xi1>, vector<8x1xf32>
    %c0_14 = arith.constant 0 : index
    %c0_15 = arith.constant 0 : index
    %40 = vector.load %arg5[%c0_14, %c0_15] : memref<1x1xf32, #tpu.memory_space<vmem>>, vector<1x1xf32>
    %41 = vector.shape_cast %39 : vector<8x1xf32> to vector<1x8x1xf32>
    %cst_16 = arith.constant dense<0.000000e+00> : vector<1xf32>
    %42 = vector.multi_reduction <add>, %41, %cst_16 [1, 2] : vector<1x8x1xf32> to vector<1xf32>
    %43 = vector.shape_cast %42 : vector<1xf32> to vector<1x1x1xf32>
    %44 = vector.extract %43[0, 0, 0] : f32 from vector<1x1x1xf32>
    %45 = vector.broadcast %44 : f32 to vector<1x1xf32>
    %46 = arith.addf %40, %45 : vector<1x1xf32>
    %c0_17 = arith.constant 0 : index
    %c0_18 = arith.constant 0 : index
    %47 = vector.load %arg5[%c0_17, %c0_18] : memref<1x1xf32, #tpu.memory_space<vmem>>, vector<1x1xf32>
    tpu.vector_store %arg5[%c0_17, %c0_18], %46 {strides = array<i32>} : memref<1x1xf32, #tpu.memory_space<vmem>>, vector<1x1xf32>,
    %c0_i32_19 = arith.constant 0 : i32
    %48 = arith.cmpi eq, %arg0, %c0_i32_19 : i32
    %49 = arith.extui %48 : i1 to i32
    %c0_i32_20 = arith.constant 0 : i32
    %50 = arith.cmpi ne, %49, %c0_i32_20 : i32
    scf.if %50 {
      %c0_21 = arith.constant 0 : index
      %c0_22 = arith.constant 0 : index
      %51 = vector.load %arg5[%c0_21, %c0_22] : memref<1x1xf32, #tpu.memory_space<vmem>>, vector<1x1xf32>
      %cst_23 = arith.constant 1.250000e-01 : f32
      %52 = vector.broadcast %cst_23 : f32 to vector<1x1xf32>
      %53 = arith.mulf %51, %52 : vector<1x1xf32>
      %c0_24 = arith.constant 0 : index
      %c0_25 = arith.constant 0 : index
      %54 = vector.load %arg4[%c0_24, %c0_25] : memref<1x1xf32, #tpu.memory_space<vmem>>, vector<1x1xf32>
      tpu.vector_store %arg4[%c0_24, %c0_25], %53 {strides = array<i32>} : memref<1x1xf32, #tpu.memory_space<vmem>>, vector<1x1xf32>,
    } else {
    }
    return
  }
  func.func @transform_0(%arg0: i32) -> (i32, i32) {
    %c0_i32 = arith.constant 0 : i32
    %c0_i32_0 = arith.constant 0 : i32
    return %arg0, %c0_i32 : i32, i32
  }
  func.func @transform_1(%arg0: i32) -> (i32, i32) {
    %c0_i32 = arith.constant 0 : i32
    %c0_i32_0 = arith.constant 0 : i32
    return %arg0, %c0_i32 : i32, i32
  }
  func.func @transform_2(%arg0: i32) -> (i32, i32) {
    %c0_i32 = arith.constant 0 : i32
    %c0_i32_0 = arith.constant 0 : i32
    %c0_i32_1 = arith.constant 0 : i32
    return %c0_i32, %c0_i32_0 : i32, i32
  }
  func.func @transform_3(%arg0: i32) -> (i32, i32) {
    %c0_i32 = arith.constant 0 : i32
    %c0_i32_0 = arith.constant 0 : i32
    %c0_i32_1 = arith.constant 0 : i32
    return %c0_i32, %c0_i32_0 : i32, i32
  }
}

</mosaic_0001>

<bundles_post_ra>
// kernel: tpu_custom_call.1
= control target key start
LH: loop header
LB: loop body
LE: loop exit
PB: predicated region body
PF: predicated region fallthrough
CT: control target
= control target key end

     0   :  { %8 = vsyncpa [#allocation4], 0  ;;  %s251_s0 = inlined_call_operand.vmem [shape: f32[8,16], index: 0, kind: input, shape index: {}]   ;;  %s252_s1 = inlined_call_operand.vmem [shape: s32[8,1], index: 1, kind: input, shape index: {}]   ;;  %s253_s2 = inlined_call_operand.hbm [shape: f32[16,16], index: 2, kind: input, shape index: {}]   ;;  %s254_s3 = inlined_call_operand.hbm [shape: f32[1,1], index: 3, kind: output, shape index: {}]  }
   0x1   :  { %9 = vsyncpa [#allocation5], 0  ;;  %s18_s14 = sshll.u32 %s253_s2, 4  ;;  %s206_s15 = smov [#allocation3]   ;;  %s19_s14 = int_to_ptr.hbm [resolvable:$true] %s18_s14 }
   0x2   :  { %s20_s16 = sshll.u32 %s206_s15, 4  ;;  %s207_s17 = smov 128   ;;  %s21_s16 = int_to_ptr.vmem [resolvable:$true] %s20_s16 }
   0x3   :  { %s208_s18 = smov 8  }
   0x4   :  { %26 = dma.hbm_to_vmem [thread:$0]  %s19_s14, 256, %s21_s16, [#allocation4], %s207_s17, %s207_s17, %s208_s18  }
   0x5   :  { %202 = dma.done.wait [#allocation4], 256  }
   0x6   :  { %203 = vsyncadd [#allocation4], 4294967040  ;;  %v209_v0 = vmov 0   ;;  %v38_v1 = vld [vmem:[%s252_s1] sm:$0xff]  ;;  %v40_v2 = vld [vmem:[#allocation3 + $0x8] sm:$0xff]  ;;  %vm35_vm0 = vcmask 0   ;;  %v54_v7 = vlaneseq }
   0x7   :  { %149 = vset.pattern.permute.xlu0 %v209_v0  ;;  %79 = vmatpush.msra.mxu0 %v40_v2  ;;  %v210_v3 = vmov 0.0   ;;  %v37_v4 = vld [vmem:[%s251_s0] sm:$0xff]  ;;  %vm41_vm1 = vcmask 130048   ;;  %vm101_vm3 = vcmask 7168   ;;  %s211_s1 = smov [#allocation6]   ;;  %s129_s25 = sshll.u32 %s254_s3, 4  ;;  %s130_s25 = int_to_ptr.hbm [resolvable:$true] %s129_s25 }
   0x8   :  { %57 = vperm.xlu0 %149, %v38_v1   ;;  %36 = vst.msk [vmem:[#allocation2] sm:$0x1] %vm35_vm0, %v210_v3  ;;  %v42_v5 = vsel %vm41_vm1, %v37_v4, -inf  ;;  %v39_v6 = vld [vmem:[#allocation3] sm:$0xff]  ;;  %v55_v8 = vand.u32 127, %v54_v7  ;;  %s127_s22 = sshll.u32 %s211_s1, 4  ;;  %s128_s22 = int_to_ptr.vmem [resolvable:$true] %s127_s22 }
   0x9   :  { %80 = vmatpush.msra.mxu0 %v39_v6 }
   0xf   :  { %v100_v36 = vld [vmem:[#allocation2] sm:$0x1] }
  0x32   :  { %43 = vmax.xlane.f32.xlu0 %v42_v5 }
  0x7a   :  { %v58_v9 = vpop.permute.xlu0 %57 }
  0x7b   :  { %vm59_vm2 = vcmp.eq.s32.totalorder %v55_v8, %v58_v9 }
  0x7c   :  { %v139_v10 = vsel %vm59_vm2, 1.0, %v210_v3 }
  0x7d   :  { %140 = vmatmul.msk.f32.vlgmr.msra.gmra.mxu0 %vm41_vm1, %v139_v10  ;;  %v85_v20 = vmul.f32 0.5, %v139_v10 }
  0xa5   :  { %v44_v11 = vpop.xlane.xlu0 %43 }
  0xa6   :  { %v45_v12 = vsub.f32 %v37_v4, %v44_v11 }
  0xa8   :  { %v46_v13 = vmul.f32 1.442695, %v45_v12 }
  0xaa   :  { %150 = vpow2.f32 %v46_v13 }
  0xb0   :  { %v151_v14 = vpop.eup %150 }
  0xb1   :  { %v48_v15 = vsel %vm41_vm1, %v151_v14, 0.0 }
  0xb2   :  { %49 = vadd.xlane.f32.xlu1 %v48_v15 }
  0xfa   :  { %v82_v17 = vpop.f32.mrf.mxu0 }
  0xfb   :  { %v86_v18 = vmul.f32 0.5, %v82_v17 }
  0xfd   :  { %v87_v22 = vadd.f32 %v86_v18, %v85_v20 }
 0x125   :  { %v50_v16 = vpop.xlane.xlu1 %49 }
 0x126   :  { %152 = vlog2.f32 %v50_v16 }
 0x12c   :  { %v153_v19 = vpop.eup %152 }
 0x12d   :  { %v52_v21 = vmul.f32 0.6931472, %v153_v19 }
 0x12f   :  { %v53_v23 = vsub.f32 %v45_v12, %v52_v21 }
 0x131   :  { %v88_v24 = vmul.f32 %v87_v22, %v53_v23 }
 0x133   :  { %v89_v25 = vsel %vm41_vm1, %v88_v24, 0.0 }
 0x134   :  { %90 = vadd.xlane.f32.xlu1 %v89_v25 }
 0x1a7   :  { %v91_v26 = vpop.xlane.xlu1 %90 }
 0x1a8   :  { %v92_v27 = vsub.f32 0.0, %v91_v26 }
 0x1aa   :  { %v102_v28 = vsel %vm101_vm3, %v92_v27, 0.0 }
 0x1ab   :  { %103 = vadd.xlane.f32.xlu2 %v102_v28 }
 0x21e   :  { %v104_v29 = vpop.xlane.xlu2 %103 }
 0x21f   :  { %v105_v30 = vrot.slane %v104_v29, 4 }
 0x221   :  { %v106_v31 = vadd.f32 %v105_v30, %v104_v29 }
 0x223   :  { %v107_v32 = vrot.slane %v106_v31, 2 }
 0x225   :  { %v108_v33 = vadd.f32 %v107_v32, %v106_v31 }
 0x227   :  { %v109_v34 = vrot.slane %v108_v33, 1 }
 0x229   :  { %v110_v35 = vadd.f32 %v109_v34, %v108_v33 }
 0x22b   :  { %141 = vpush %v110_v35 }
 0x25c   :  { %s142_s0 = spop %141 }
 0x25d   :  { %v112_v37 = vstv %s142_s0 }
 0x25e   :  { %v113_v38 = vadd.f32 %v112_v37, %v100_v36 }
 0x260   :  { %115 = vst.msk [vmem:[#allocation2] sm:$0x1] %vm35_vm0, %v113_v38 }
 0x267   :  { %v119_v39 = vld [vmem:[#allocation2] sm:$0x1] }
 0x268   :  { %v120_v40 = vmul.f32 0.125, %v119_v39 }
 0x26a   :  { %121 = vst.msk [vmem:[#allocation6] sm:$0x1] %vm35_vm0, %v120_v40 }
 0x26b   :  { %132 = dma.vmem_to_hbm [thread:$0]  %s128_s22, 16, %s130_s25, [#allocation5]  }
 0x26c   :  { %204 = dma.done.wait [#allocation5], 16  }
 0x26d   :  { %205 = vsyncadd [#allocation5], 4294967280 }
 0x26e   :  { %137 = vsyncpa [#allocation4], 1 }
 0x26f   :  { %138 = vsyncpa [#allocation5], 1 }

</bundles_post_ra>
